<compile_context>
chip_gen: v5e
topology: v5e:2x2
jax: 0.10.0
libtpu: 0.0.40
codegen_flags: <defaults>
</compile_context>

<pallas_src>
import jax
import jax.numpy as jnp
from jax import lax
from jax.experimental import pallas as pl
from jax.experimental.pallas import tpu as pltpu


# ---------------------------------------------------------------------------
# helpers
# ---------------------------------------------------------------------------
def _round_up(x, m):
    return (x + m - 1) // m * m


def _pad2(a, rows, cols):
    """Zero-pad a 2-D f32 array up to (rows, cols)."""
    a = jnp.asarray(a, jnp.float32)
    return jnp.pad(a, ((0, rows - a.shape[0]), (0, cols - a.shape[1])))


def _apply_act(y, act, true_n, pad_n):
    """Activation on an f32 (TB, pad_n) tile; softmax masks padded lanes."""
    if act == "relu":
        return jnp.maximum(y, 0.0)
    if act == "tanh":
        return jnp.tanh(y)
    if act == "sigmoid":
        return jax.nn.sigmoid(y)
    if act == "lrelu":
        return jnp.where(y >= 0.0, y, 0.01 * y)   # nn.LeakyReLU default slope
    if act == "softmax":
        if pad_n > true_n:
            col = lax.broadcasted_iota(jnp.int32, y.shape, dimension=1)
            y = jnp.where(col < true_n, y, -1e30)
        return jax.nn.softmax(y, axis=-1)          # torch legacy dim=1 for 2-D
    if act == "pass":
        return y
    raise ValueError(f"unknown activation {act!r}")


def _fold_bn(w, b, scale, shift, order):
    """Fold eval-mode BN into (w, b) when it precedes the activation."""
    if order == "first":
        return w * scale[None, :], b * scale + shift
    return w, b


# ---------------------------------------------------------------------------
# One-time probe: does this Pallas accept pl.Buffered(1) (single-buffered
# grid-invariant operands)?  Falls back to default double-buffering if not.
# ---------------------------------------------------------------------------
_SINGLE_BUFFER_OK = None


def _probe_single_buffer():
    def k(x_ref, o_ref):
        o_ref[...] = x_ref[...] * 2.0
    try:
        x = jnp.ones((16, 128), jnp.float32)
        r = pl.pallas_call(
            k,
            out_shape=jax.ShapeDtypeStruct((16, 128), jnp.float32),
            grid=(2,),
            in_specs=[pl.BlockSpec((16, 128), lambda i: (0, 0),
                                   pipeline_mode=pl.Buffered(1))],
            out_specs=pl.BlockSpec((16, 128), lambda i: (0, 0)),
        )(x)
        jax.block_until_ready(r)
        return True
    except Exception:
        return False


def _single_buffer_supported():
    global _SINGLE_BUFFER_OK
    if _SINGLE_BUFFER_OK is None:
        _SINGLE_BUFFER_OK = _probe_single_buffer()
    return _SINGLE_BUFFER_OK


# ---------------------------------------------------------------------------
# Whole-network fused kernel (built from static layer metadata `cfg`)
# ---------------------------------------------------------------------------
def _make_kernel(cfg):
    def kernel(x_ref, w_ref, v_ref, out_ref):
        x = x_ref[...]                                 # (TB, sumK) f32

        def vec(row, n_pad):                           # (1, n_pad) f32
            return v_ref[row:row + 1, 0:n_pad]

        def matw(off, rows, n_pad):                    # (rows, n_pad) bf16
            return w_ref[off:off + rows, 0:n_pad]

        def layer(h, spec):
            w = matw(spec["w_off"], spec["w_rows"], spec["out_pad"])
            y = jnp.dot(h.astype(jnp.bfloat16), w,
                        preferred_element_type=jnp.float32)
            y = y + vec(spec["bias_row"], spec["out_pad"])
            y = _apply_act(y, spec["act"], spec["out_true"], spec["out_pad"])
            if spec["post_affine"]:                    # BN after act (unfoldable)
                y = (y * vec(spec["scale_row"], spec["out_pad"])
                     + vec(spec["shift_row"], spec["out_pad"]))
            return y

        # --- per-block SubNetworks, fused with combination-layer-0 partials ---
        c0 = cfg["comb0"]
        acc = None
        for blk in cfg["blocks"]:
            h = x[:, blk["in_off"]:blk["in_off"] + blk["in_dim"]]
            for spec in blk["layers"]:
                h = layer(h, spec)
            piece = blk["c0_piece"]
            w = matw(piece["w_off"], piece["w_rows"], c0["out_pad"])
            part = jnp.dot(h.astype(jnp.bfloat16), w,
                           preferred_element_type=jnp.float32)
            acc = part if acc is None else acc + part
        y = acc + vec(c0["bias_row"], c0["out_pad"])
        y = _apply_act(y, c0["act"], c0["out_true"], c0["out_pad"])
        if c0["post_affine"]:
            y = (y * vec(c0["scale_row"], c0["out_pad"])
                 + vec(c0["shift_row"], c0["out_pad"]))

        # --- remaining combination layers ---
        for spec in cfg["comb_rest"]:
            y = layer(y, spec)

        # --- output head: Linear -> Sigmoid, stored at TRUE width ---
        head = cfg["head"]
        w = matw(head["w_off"], head["w_rows"], head["out_pad"])
        o = jnp.dot(y.astype(jnp.bfloat16), w,
                    preferred_element_type=jnp.float32)
        o = jax.nn.sigmoid(o + vec(head["bias_row"], head["out_pad"]))
        out_ref[...] = o[:, :head["out_true"]].astype(out_ref.dtype)

    return kernel


# ---------------------------------------------------------------------------
# Deterministic parameter initialization (synthetic; no checkpoint loading)
# ---------------------------------------------------------------------------
def init_linear(key, in_f, out_f):
    kw, kb = jax.random.split(key)
    bound = 1.0 / float(in_f) ** 0.5
    w = jax.random.uniform(kw, (in_f, out_f), minval=-bound, maxval=bound,
                           dtype=jnp.float32)
    b = jax.random.uniform(kb, (out_f,), minval=-bound, maxval=bound,
                           dtype=jnp.float32)
    return w, b


def init_bn_folded(key, n, normtype):
    """(scale, shift) equivalent to eval-mode BatchNorm1d (or identity)."""
    if normtype == "pass":
        return jnp.ones((n,), jnp.float32), jnp.zeros((n,), jnp.float32)
    kg, kb, km, kv = jax.random.split(key, 4)
    gamma = 1.0 + 0.1 * jax.random.normal(kg, (n,), dtype=jnp.float32)
    beta = 0.1 * jax.random.normal(kb, (n,), dtype=jnp.float32)
    running_mean = 0.1 * jax.random.normal(km, (n,), dtype=jnp.float32)
    running_var = 1.0 + 0.1 * jax.random.uniform(kv, (n,), dtype=jnp.float32)
    eps = 1e-5
    scale = gamma / jnp.sqrt(running_var + eps)
    shift = beta - running_mean * scale
    return scale, shift


# ---------------------------------------------------------------------------
# CombinedNetwork (eval-mode forward) as a single fused Pallas kernel
# ---------------------------------------------------------------------------
class CombinedNetworkPallas:
    MAX_TB = 512          # batch-tile cap
    W_ALIGN = 16          # weight-slab row alignment (bf16 sublane packing)

    def __init__(self, key, input_dict, hidden_dict, dropout_dict,
                 activation_dict, norm_dict, combination_dict, output_size):
        self.blocks = list(input_dict.keys())
        self.input_dict = dict(input_dict)
        self.hidden_dict = {k: list(v) for k, v in hidden_dict.items()}
        self.activation_dict = activation_dict
        self.norm_dict = norm_dict
        self.combination_dict = combination_dict
        self.output_size = output_size

        # ---- raw (unfolded, unpadded) params: used for reference + folding ----
        self.raw_subnet = {}
        for iblock in self.blocks:
            sizes = [input_dict[iblock]] + list(hidden_dict[iblock])
            layers = []
            for li in range(len(hidden_dict[iblock])):
                key, k1, k2 = jax.random.split(key, 3)
                w, b = init_linear(k1, sizes[li], sizes[li + 1])
                scale, shift = init_bn_folded(k2, sizes[li + 1],
                                              norm_dict[iblock]["type"])
                layers.append((w, b, scale, shift))
            self.raw_subnet[iblock] = layers

        input_combined = sum(
            (hidden_dict[b][-1] if len(hidden_dict[b]) > 0 else input_dict[b])
            for b in self.blocks)
        hidden_sizes = list(combination_dict["hidden"])
        sizes = [input_combined] + hidden_sizes
        self.raw_comb = []
        for li in range(len(hidden_sizes)):
            key, k1, k2 = jax.random.split(key, 3)
            w, b = init_linear(k1, sizes[li], sizes[li + 1])
            scale, shift = init_bn_folded(k2, sizes[li + 1],
                                          combination_dict["normalization"])
            self.raw_comb.append((w, b, scale, shift))
        key, k1 = jax.random.split(key)
        self.raw_out = init_linear(k1, hidden_sizes[-1], output_size)

        self._build_packed()

    # -- fold BN (when foldable), pack everything into two slabs --------------
    def _build_packed(self):
        out_dims = []
        for iblock in self.blocks:
            out_dims += [w.shape[1] for (w, _, _, _) in self.raw_subnet[iblock]]
        out_dims += [w.shape[1] for (w, _, _, _) in self.raw_comb]
        out_dims.append(self.output_size)
        self.W_max = max(_round_up(n, 128) for n in out_dims)

        w_pieces, v_rows = [], []
        w_cursor = [0]

        def add_weight(w_mat, rows_used):
            rows_pad = _round_up(max(rows_used, 1), self.W_ALIGN)
            w_pieces.append(_pad2(w_mat, rows_pad, self.W_max))
            off = w_cursor[0]
            w_cursor[0] += rows_pad
            return off

        def add_vec(v):
            v = jnp.asarray(v, jnp.float32)
            v_rows.append(jnp.pad(v, (0, self.W_max - v.shape[0])))
            return len(v_rows) - 1

        # --- per-block SubNetworks ---
        blocks_cfg = []
        in_off = 0
        for iblock in self.blocks:
            order = self.norm_dict[iblock]["order"]
            ntype = self.norm_dict[iblock]["type"]
            act = self.activation_dict[iblock]
            layers_cfg = []
            cur_true = self.input_dict[iblock]
            cur_rows = self.input_dict[iblock]      # width of h into next layer
            for (w, b, scale, shift) in self.raw_subnet[iblock]:
                out_true = w.shape[1]
                out_pad = _round_up(out_true, 128)
                post_affine = (order != "first") and (ntype == "batch1d")
                w_f, b_f = _fold_bn(w, b, scale, shift, order)
                layers_cfg.append(dict(
                    w_off=add_weight(w_f, cur_rows), w_rows=cur_rows,
                    bias_row=add_vec(b_f),
                    out_true=out_true, out_pad=out_pad,
                    act=act, post_affine=post_affine,
                    scale_row=add_vec(scale) if post_affine else -1,
                    shift_row=add_vec(shift) if post_affine else -1))
                cur_true, cur_rows = out_true, out_pad
            blocks_cfg.append(dict(in_off=in_off, in_dim=self.input_dict[iblock],
                                   layers=layers_cfg,
                                   out_true=cur_true, out_rows=cur_rows))
            in_off += self.input_dict[iblock]
        self.sumK = in_off

        # --- combination layer 0: weight split row-wise per block (no concat) ---
        order = self.combination_dict["norm_order"]
        ntype = self.combination_dict["normalization"]
        act = self.combination_dict["activation"]
        (w, b, scale, shift) = self.raw_comb[0]
        out_true = w.shape[1]
        out_pad = _round_up(out_true, 128)
        post_affine = (order != "first") and (ntype == "batch1d")
        w_f, b_f = _fold_bn(w, b, scale, shift, order)
        row = 0
        for blk in blocks_cfg:
            bt = blk["out_true"]
            blk["c0_piece"] = dict(w_off=add_weight(w_f[row:row + bt, :],
                                                    blk["out_rows"]),
                                   w_rows=blk["out_rows"])
            row += bt
        comb0 = dict(bias_row=add_vec(b_f), out_true=out_true, out_pad=out_pad,
                     act=act, post_affine=post_affine,
                     scale_row=add_vec(scale) if post_affine else -1,
                     shift_row=add_vec(shift) if post_affine else -1)
        cur_rows = out_pad

        # --- remaining combination layers ---
        comb_rest_cfg = []
        for (w, b, scale, shift) in self.raw_comb[1:]:
            out_true = w.shape[1]
            out_pad = _round_up(out_true, 128)
            post_affine = (order != "first") and (ntype == "batch1d")
            w_f, b_f = _fold_bn(w, b, scale, shift, order)
            comb_rest_cfg.append(dict(
                w_off=add_weight(w_f, cur_rows), w_rows=cur_rows,
                bias_row=add_vec(b_f),
                out_true=out_true, out_pad=out_pad,
                act=act, post_affine=post_affine,
                scale_row=add_vec(scale) if post_affine else -1,
                shift_row=add_vec(shift) if post_affine else -1))
            cur_rows = out_pad

        # --- output head ---
        w_out, b_out = self.raw_out
        head = dict(w_off=add_weight(w_out, cur_rows), w_rows=cur_rows,
                    bias_row=add_vec(b_out),
                    out_true=self.output_size,
                    out_pad=_round_up(self.output_size, 128))

        self.w_slab = jnp.concatenate(w_pieces, axis=0).astype(jnp.bfloat16)
        self.v_slab = jnp.stack(v_rows, axis=0).astype(jnp.float32)
        self.cfg = dict(blocks=blocks_cfg, comb0=comb0,
                        comb_rest=comb_rest_cfg, head=head)
        self._kernel = _make_kernel(self.cfg)

    # -- tiling / VMEM policy -------------------------------------------------
    def _choose_tb(self, B):
        # target >= 8 grid steps (pipeline overlap + even split across v7x TCs),
        # rows a multiple of 16 (bf16 sublane packing), 16 <= TB <= MAX_TB.
        tb = _round_up(max(1, -(-B // 8)), 16)
        return max(16, min(self.MAX_TB, tb))

    def _vmem_limit(self, TB, single_buf):
        try:
            cap = int(pltpu.get_tpu_info().vmem_capacity_bytes)
        except Exception:
            cap = 128 << 20
        cap = (cap * 3) // 4                 # headroom for Mosaic internal scratch
        nbuf = 1 if single_buf else 2
        est = 2 * TB * self.sumK * 4                          # input tiles (f32)
        est += 2 * TB * self.output_size * 4                  # output tiles
        est += nbuf * (self.w_slab.size * 2 + self.v_slab.size * 4)
        est += 6 * TB * self.W_max * 4                        # live intermediates
        return int(min(max(2 * est, 32 << 20), cap))

    # -- fused forward: one pallas_call, batch-tiled grid ---------------------
    def __call__(self, input_vectors):
        B = input_vectors[0].shape[0]
        TB = self._choose_tb(B)
        B_pad = _round_up(B, TB)
        grid = (B_pad // TB,)

        # concat block inputs at TRUE widths (no 128-lane HBM padding)
        x_cat = jnp.concatenate(
            [jnp.asarray(x, jnp.float32) for x in input_vectors], axis=1)
        x_cat = jnp.pad(x_cat, ((0, B_pad - B), (0, 0)))

        single_buf = _single_buffer_supported()

        def param_spec(shape):
            if single_buf:
                return pl.BlockSpec(shape, lambda i: (0, 0),
                                    pipeline_mode=pl.Buffered(1))
            return pl.BlockSpec(shape, lambda i: (0, 0))

        in_specs = [
            pl.BlockSpec((TB, self.sumK), lambda i: (i, 0)),   # batch tile
            param_spec(self.w_slab.shape),                     # bf16 weight slab
            param_spec(self.v_slab.shape),                     # f32 bias/affine slab
        ]
        out_spec = pl.BlockSpec((TB, self.output_size), lambda i: (i, 0))

        out = pl.pallas_call(
            self._kernel,
            out_shape=jax.ShapeDtypeStruct((B_pad, self.output_size),
                                           jnp.float32),
            grid=grid,
            in_specs=in_specs,
            out_specs=out_spec,
            compiler_params=pltpu.CompilerParams(
                dimension_semantics=("parallel",),
                vmem_limit_bytes=self._vmem_limit(TB, single_buf)),
        )(x_cat, self.w_slab, self.v_slab)

        return out[:B]

    # -- pure-JAX f32 reference (unfolded params) for correctness checking ----
    def reference_forward(self, input_vectors):
        outs = []
        for iblock, x in zip(self.blocks, input_vectors):
            h = jnp.asarray(x, jnp.float32)
            order = self.norm_dict[iblock]["order"]
            act = self.activation_dict[iblock]
            for (w, b, scale, shift) in self.raw_subnet[iblock]:
                h = h @ w + b
                if order == "first":
                    h = h * scale + shift
                    h = _apply_act(h, act, h.shape[1], h.shape[1])
                else:
                    h = _apply_act(h, act, h.shape[1], h.shape[1])
                    h = h * scale + shift
            outs.append(h)
        comb = jnp.concatenate(outs, axis=1)
        order = self.combination_dict["norm_order"]
        act = self.combination_dict["activation"]
        for (w, b, scale, shift) in self.raw_comb:
            comb = comb @ w + b
            if order == "first":
                comb = comb * scale + shift
                comb = _apply_act(comb, act, comb.shape[1], comb.shape[1])
            else:
                comb = _apply_act(comb, act, comb.shape[1], comb.shape[1])
                comb = comb * scale + shift
        w_out, b_out = self.raw_out
        return jax.nn.sigmoid(comb @ w_out + b_out)


# ---------------------------------------------------------------------------
if __name__ == "__main__":
    key = jax.random.PRNGKey(0)

    # Small synthetic configuration consistent with the module's __init__.
    input_dict = {"eeg": 16, "meta": 8}
    hidden_dict = {"eeg": [32, 32], "meta": []}          # "meta" block passes through
    dropout_dict = {"eeg": [0.1, 0.1], "meta": []}       # eval mode -> identity
    activation_dict = {"eeg": "relu", "meta": "relu"}
    norm_dict = {"eeg": {"order": "first", "type": "batch1d"},
                 "meta": {"order": "first", "type": "pass"}}
    combination_dict = {"hidden": [32, 16], "dropout": [0.1, 0.1],
                        "activation": "relu", "norm_order": "first",
                        "normalization": "batch1d"}
    output_size = 1

    key, kparams, kx1, kx2 = jax.random.split(key, 4)
    model = CombinedNetworkPallas(kparams, input_dict, hidden_dict, dropout_dict,
                                  activation_dict, norm_dict, combination_dict,
                                  output_size)

    B = 4
    x_eeg = jax.random.normal(kx1, (B, input_dict["eeg"]), dtype=jnp.float32)
    x_meta = jax.random.normal(kx2, (B, input_dict["meta"]), dtype=jnp.float32)

    out = jax.block_until_ready(model([x_eeg, x_meta]))
    ref = jax.block_until_ready(model.reference_forward([x_eeg, x_meta]))

    assert out.shape == (B, output_size)
    assert bool(jnp.all((out >= 0.0) & (out <= 1.0)))
    # bf16 matmul operands + exact BN fold -> relaxed tolerance vs full-f32 ref.
    assert bool(jnp.allclose(out, ref, atol=2e-2, rtol=2e-2)), \
        f"mismatch: {out} vs {ref}"
    print("KERNEL_OK")
</pallas_src>

<mosaic_0001>
module attributes {stable_mosaic.version = 11 : i64} {
  func.func @k(%arg0: i32, %arg1: memref<16x128xf32, #tpu.memory_space<vmem>>, %arg2: memref<16x128xf32, #tpu.memory_space<vmem>>) attributes {dimension_semantics = [#tpu.dimension_semantics<arbitrary>], iteration_bounds = array<i64: 2>, scalar_prefetch = 0 : i64, scratch_operands = 0 : i64, tpu.core_type = #tpu.core_type<tc>, window_params = [{pipeline_mode = #tpu.pipeline_mode<synchronous>, transform_indices = @transform_0, window_bounds = array<i64: 16, 128>}, {pipeline_mode = #tpu.pipeline_mode<synchronous>, transform_indices = @transform_1, window_bounds = array<i64: 16, 128>}]} {
    %c0 = arith.constant 0 : index
    %c0_0 = arith.constant 0 : index
    %0 = vector.load %arg1[%c0, %c0_0] : memref<16x128xf32, #tpu.memory_space<vmem>>, vector<16x128xf32>
    %cst = arith.constant 2.000000e+00 : f32
    %1 = vector.broadcast %cst : f32 to vector<16x128xf32>
    %2 = arith.mulf %0, %1 : vector<16x128xf32>
    %c0_1 = arith.constant 0 : index
    %c0_2 = arith.constant 0 : index
    %3 = vector.load %arg2[%c0_1, %c0_2] : memref<16x128xf32, #tpu.memory_space<vmem>>, vector<16x128xf32>
    tpu.vector_store %arg2[%c0_1, %c0_2], %2 {strides = array<i32>} : memref<16x128xf32, #tpu.memory_space<vmem>>, vector<16x128xf32>,
    return
  }
  func.func @transform_0(%arg0: i32) -> (i32, i32) {
    %c0_i32 = arith.constant 0 : i32
    %c0_i32_0 = arith.constant 0 : i32
    %c0_i32_1 = arith.constant 0 : i32
    return %c0_i32, %c0_i32_0 : i32, i32
  }
  func.func @transform_1(%arg0: i32) -> (i32, i32) {
    %c0_i32 = arith.constant 0 : i32
    %c0_i32_0 = arith.constant 0 : i32
    %c0_i32_1 = arith.constant 0 : i32
    return %c0_i32, %c0_i32_0 : i32, i32
  }
}

module attributes {stable_mosaic.version = 11 : i64} {
  func.func @kernel(%arg0: i32, %arg1: memref<16x24xf32, #tpu.memory_space<vmem>>, %arg2: memref<544x128xbf16, #tpu.memory_space<vmem>>, %arg3: memref<5x128xf32, #tpu.memory_space<vmem>>, %arg4: memref<16x1xf32, #tpu.memory_space<vmem>>) attributes {dimension_semantics = [#tpu.dimension_semantics<parallel>], iteration_bounds = array<i64: 1>, scalar_prefetch = 0 : i64, scratch_operands = 0 : i64, tpu.core_type = #tpu.core_type<tc>, window_params = [{transform_indices = @transform_0, window_bounds = array<i64: 16, 24>}, {pipeline_mode = #tpu.pipeline_mode<synchronous>, transform_indices = @transform_1, window_bounds = array<i64: 544, 128>}, {pipeline_mode = #tpu.pipeline_mode<synchronous>, transform_indices = @transform_2, window_bounds = array<i64: 5, 128>}, {transform_indices = @transform_3, window_bounds = array<i64: 16, 1>}]} {
    %c0 = arith.constant 0 : index
    %c0_0 = arith.constant 0 : index
    %0 = vector.load %arg1[%c0, %c0_0] : memref<16x24xf32, #tpu.memory_space<vmem>>, vector<16x24xf32>
    %1 = vector.extract_strided_slice %0 {offsets = [0, 0], sizes = [16, 16], strides = [1, 1]} : vector<16x24xf32> to vector<16x16xf32>
    %c0_1 = arith.constant 0 : index
    %c0_2 = arith.constant 0 : index
    %2 = vector.load %arg2[%c0_1, %c0_2] : memref<544x128xbf16, #tpu.memory_space<vmem>>, vector<16x128xbf16>
    %3 = arith.truncf %1 : vector<16x16xf32> to vector<16x16xbf16>
    %cst = arith.constant dense<0.000000e+00> : vector<16x128xf32>
    %4 = tpu.matmul %3, %2, %cst {dimension_numbers = #tpu.dot_dimension_numbers<[1], [0], [0], [1], [0, 0, 1, 1], [], []>} : vector<16x16xbf16>, vector<16x128xbf16>, vector<16x128xf32> -> vector<16x128xf32>
    %c0_3 = arith.constant 0 : index
    %c0_4 = arith.constant 0 : index
    %5 = vector.load %arg3[%c0_3, %c0_4] : memref<5x128xf32, #tpu.memory_space<vmem>>, vector<1x128xf32>
    %6 = vector.broadcast %5 : vector<1x128xf32> to vector<16x128xf32>
    %7 = arith.addf %4, %6 : vector<16x128xf32>
    %cst_5 = arith.constant 0.000000e+00 : f32
    %8 = vector.broadcast %cst_5 : f32 to vector<16x128xf32>
    %9 = arith.maximumf %7, %8 : vector<16x128xf32>
    %c16 = arith.constant 16 : index
    %c0_6 = arith.constant 0 : index
    %10 = vector.load %arg2[%c16, %c0_6] : memref<544x128xbf16, #tpu.memory_space<vmem>>, vector<128x128xbf16>
    %11 = arith.truncf %9 : vector<16x128xf32> to vector<16x128xbf16>
    %cst_7 = arith.constant dense<0.000000e+00> : vector<16x128xf32>
    %12 = tpu.matmul %11, %10, %cst_7 {dimension_numbers = #tpu.dot_dimension_numbers<[1], [0], [0], [1], [0, 0, 1, 1], [], []>} : vector<16x128xbf16>, vector<128x128xbf16>, vector<16x128xf32> -> vector<16x128xf32>
    %c1 = arith.constant 1 : index
    %c0_8 = arith.constant 0 : index
    %13 = vector.load %arg3[%c1, %c0_8] : memref<5x128xf32, #tpu.memory_space<vmem>>, vector<1x128xf32>
    %14 = vector.broadcast %13 : vector<1x128xf32> to vector<16x128xf32>
    %15 = arith.addf %12, %14 : vector<16x128xf32>
    %cst_9 = arith.constant 0.000000e+00 : f32
    %16 = vector.broadcast %cst_9 : f32 to vector<16x128xf32>
    %17 = arith.maximumf %15, %16 : vector<16x128xf32>
    %c144 = arith.constant 144 : index
    %c0_10 = arith.constant 0 : index
    %18 = vector.load %arg2[%c144, %c0_10] : memref<544x128xbf16, #tpu.memory_space<vmem>>, vector<128x128xbf16>
    %19 = arith.truncf %17 : vector<16x128xf32> to vector<16x128xbf16>
    %cst_11 = arith.constant dense<0.000000e+00> : vector<16x128xf32>
    %20 = tpu.matmul %19, %18, %cst_11 {dimension_numbers = #tpu.dot_dimension_numbers<[1], [0], [0], [1], [0, 0, 1, 1], [], []>} : vector<16x128xbf16>, vector<128x128xbf16>, vector<16x128xf32> -> vector<16x128xf32>
    %21 = vector.extract_strided_slice %0 {offsets = [0, 16], sizes = [16, 8], strides = [1, 1]} : vector<16x24xf32> to vector<16x8xf32>
    %c272 = arith.constant 272 : index
    %c0_12 = arith.constant 0 : index
    %22 = vector.load %arg2[%c272, %c0_12] : memref<544x128xbf16, #tpu.memory_space<vmem>>, vector<8x128xbf16>
    %23 = arith.truncf %21 : vector<16x8xf32> to vector<16x8xbf16>
    %cst_13 = arith.constant dense<0.000000e+00> : vector<16x128xf32>
    %24 = tpu.matmul %23, %22, %cst_13 {dimension_numbers = #tpu.dot_dimension_numbers<[1], [0], [0], [1], [0, 0, 1, 1], [], []>} : vector<16x8xbf16>, vector<8x128xbf16>, vector<16x128xf32> -> vector<16x128xf32>
    %25 = arith.addf %20, %24 : vector<16x128xf32>
    %c2 = arith.constant 2 : index
    %c0_14 = arith.constant 0 : index
    %26 = vector.load %arg3[%c2, %c0_14] : memref<5x128xf32, #tpu.memory_space<vmem>>, vector<1x128xf32>
    %27 = vector.broadcast %26 : vector<1x128xf32> to vector<16x128xf32>
    %28 = arith.addf %25, %27 : vector<16x128xf32>
    %cst_15 = arith.constant 0.000000e+00 : f32
    %29 = vector.broadcast %cst_15 : f32 to vector<16x128xf32>
    %30 = arith.maximumf %28, %29 : vector<16x128xf32>
    %c288 = arith.constant 288 : index
    %c0_16 = arith.constant 0 : index
    %31 = vector.load %arg2[%c288, %c0_16] : memref<544x128xbf16, #tpu.memory_space<vmem>>, vector<128x128xbf16>
    %32 = arith.truncf %30 : vector<16x128xf32> to vector<16x128xbf16>
    %cst_17 = arith.constant dense<0.000000e+00> : vector<16x128xf32>
    %33 = tpu.matmul %32, %31, %cst_17 {dimension_numbers = #tpu.dot_dimension_numbers<[1], [0], [0], [1], [0, 0, 1, 1], [], []>} : vector<16x128xbf16>, vector<128x128xbf16>, vector<16x128xf32> -> vector<16x128xf32>
    %c3 = arith.constant 3 : index
    %c0_18 = arith.constant 0 : index
    %34 = vector.load %arg3[%c3, %c0_18] : memref<5x128xf32, #tpu.memory_space<vmem>>, vector<1x128xf32>
    %35 = vector.broadcast %34 : vector<1x128xf32> to vector<16x128xf32>
    %36 = arith.addf %33, %35 : vector<16x128xf32>
    %cst_19 = arith.constant 0.000000e+00 : f32
    %37 = vector.broadcast %cst_19 : f32 to vector<16x128xf32>
    %38 = arith.maximumf %36, %37 : vector<16x128xf32>
    %c416 = arith.constant 416 : index
    %c0_20 = arith.constant 0 : index
    %39 = vector.load %arg2[%c416, %c0_20] : memref<544x128xbf16, #tpu.memory_space<vmem>>, vector<128x128xbf16>
    %40 = arith.truncf %38 : vector<16x128xf32> to vector<16x128xbf16>
    %cst_21 = arith.constant dense<0.000000e+00> : vector<16x128xf32>
    %41 = tpu.matmul %40, %39, %cst_21 {dimension_numbers = #tpu.dot_dimension_numbers<[1], [0], [0], [1], [0, 0, 1, 1], [], []>} : vector<16x128xbf16>, vector<128x128xbf16>, vector<16x128xf32> -> vector<16x128xf32>
    %c4 = arith.constant 4 : index
    %c0_22 = arith.constant 0 : index
    %42 = vector.load %arg3[%c4, %c0_22] : memref<5x128xf32, #tpu.memory_space<vmem>>, vector<1x128xf32>
    %43 = vector.broadcast %42 : vector<1x128xf32> to vector<16x128xf32>
    %44 = arith.addf %41, %43 : vector<16x128xf32>
    %45 = arith.negf %44 : vector<16x128xf32>
    %46 = math.exp %45 : vector<16x128xf32>
    %cst_23 = arith.constant 1.000000e+00 : f32
    %47 = vector.broadcast %cst_23 : f32 to vector<16x128xf32>
    %48 = arith.addf %47, %46 : vector<16x128xf32>
    %49 = arith.divf %47, %48 : vector<16x128xf32>
    %50 = vector.extract_strided_slice %49 {offsets = [0, 0], sizes = [16, 1], strides = [1, 1]} : vector<16x128xf32> to vector<16x1xf32>
    %c0_24 = arith.constant 0 : index
    %c0_25 = arith.constant 0 : index
    %51 = vector.load %arg4[%c0_24, %c0_25] : memref<16x1xf32, #tpu.memory_space<vmem>>, vector<16x1xf32>
    tpu.vector_store %arg4[%c0_24, %c0_25], %50 {strides = array<i32>} : memref<16x1xf32, #tpu.memory_space<vmem>>, vector<16x1xf32>,
    return
  }
  func.func @transform_0(%arg0: i32) -> (i32, i32) {
    %c0_i32 = arith.constant 0 : i32
    %c0_i32_0 = arith.constant 0 : i32
    return %arg0, %c0_i32 : i32, i32
  }
  func.func @transform_1(%arg0: i32) -> (i32, i32) {
    %c0_i32 = arith.constant 0 : i32
    %c0_i32_0 = arith.constant 0 : i32
    %c0_i32_1 = arith.constant 0 : i32
    return %c0_i32, %c0_i32_0 : i32, i32
  }
  func.func @transform_2(%arg0: i32) -> (i32, i32) {
    %c0_i32 = arith.constant 0 : i32
    %c0_i32_0 = arith.constant 0 : i32
    %c0_i32_1 = arith.constant 0 : i32
    return %c0_i32, %c0_i32_0 : i32, i32
  }
  func.func @transform_3(%arg0: i32) -> (i32, i32) {
    %c0_i32 = arith.constant 0 : i32
    %c0_i32_0 = arith.constant 0 : i32
    return %arg0, %c0_i32 : i32, i32
  }
}

</mosaic_0001>

<bundles_post_ra>
// kernel: tpu_custom_call.1
= control target key start
LH: loop header
LB: loop body
LE: loop exit
PB: predicated region body
PF: predicated region fallthrough
CT: control target
= control target key end

     0   :  { %6 = vsyncpa [#allocation3], 0  ;;  %s302_s0 = inlined_call_operand.hbm [shape: f32[16,128], index: 0, kind: input, shape index: {}]   ;;  %s303_s1 = inlined_call_operand.hbm [shape: f32[16,128], index: 1, kind: output, shape index: {}]  }
   0x1   :  { %7 = vsyncpa [#allocation4], 0  ;;  %s285_s6 = smov 0  }
   0x2 LB: > { %s71_s9 = sshll.u32 %s302_s0, 4  ;;  %s156_s10 = sadd.s32 4294967295, %s267_s6   ;;  %s267_s6 = sphi %s285_s6, %s13_s6   ;;  %s72_s9 = int_to_ptr.hbm [resolvable:$true] %s71_s9 }
   0x3   : > { %p157_p0 = scmp.ge.s32.totalorder %s267_s6, 1  ;;  %p60_p1 = scmp.lt.s32.totalorder %s267_s6, 3 }
   0x4   : > { %p177_p2 = scmp.eq.s32.totalorder %s156_s10, 0  ;;  %s269_s11 = smov [#allocation2]  }
   0x5   : > { %p61_p3 = pnand %p157_p0, %p60_p1  ;;  %s73_s12 = sshll.u32 %s269_s11, 4  ;;  %s74_s12 = int_to_ptr.vmem [resolvable:$true] %s73_s12 }
   0x6   : > { %s270_s13 = smov 128   ;;  %s271_s14 = smov 8  }
   0x7   : > { %p173_p4 = pneg %p61_p3  ;;  %89 = sbr.rel (%p61_p3) target bundleno = 21 (0x15), region = 24 }
   0x9   : > { %p174_p5 = pnand %p177_p2, %p173_p4 }
   0xb   : > { %176 = dma.hbm_to_vmem [thread:$0]  (!%p174_p5), %s72_s9, 256, %s74_s12, [#allocation3], %s270_s13, %s270_s13, %s271_s14  }
   0xc   : > { %258 = dma.done.wait (%p177_p2), [#allocation3], 256  }
   0xd   : > { %260 = vsyncadd (%p177_p2), [#allocation3], 4294967040  ;;  %s272_s15 = smov [#allocation5]   ;;  %s113_s19 = sshll.u32 %s303_s1, 4  ;;  %v100_v0 = vld [vmem:[#allocation2] sm:$0xff]  ;;  %v101_v1 = vld [vmem:[#allocation2 + $0x8] sm:$0xff]  ;;  %s114_s19 = int_to_ptr.hbm [resolvable:$true] %s113_s19 }
   0xe   : > { %s111_s16 = sshll.u32 %s272_s15, 4  ;;  %p179_p6 = scmp.eq.s32.totalorder %s156_s10, 1  ;;  %v102_v2 = vmul.f32 2.0, %v100_v0  ;;  %v103_v3 = vmul.f32 2.0, %v101_v1  ;;  %s112_s16 = int_to_ptr.vmem [resolvable:$true] %s111_s16 }
   0xf   : > { %s273_s20 = smov 128   ;;  %s274_s21 = smov 8  }
  0x10   : > { %104 = vst [vmem:[#allocation5] sm:$0xff] %v102_v2 }
  0x11   : > { %105 = vst [vmem:[#allocation5 + $0x8] sm:$0xff] %v103_v3 }
  0x12   : > { %170 = dma.vmem_to_hbm [thread:$0]  (%p179_p6), %s112_s16, 256, %s114_s19, [#allocation4], %s273_s20, %s273_s20, %s274_s21  }
  0x13   : > { %262 = dma.done.wait (%p179_p6), [#allocation4], 256  }
  0x14   : > { %264 = vsyncadd (%p179_p6), [#allocation4], 4294967040 }
  0x15 PF: > { %s13_s6 = sadd.s32 1, %s267_s6  }
  0x16   : > { %p10_p7 = scmp.ge.s32.totalorder %s13_s6, 4  }
  0x18   :  { %12 = sbr.rel (!%p10_p7) target bundleno = 2 (0x2), region = 53 }
  0x1d   :  { %130 = vsyncpa [#allocation3], 1 }
  0x1e   :  { %132 = vsyncpa [#allocation3 + $0x1], 1 }
  0x1f   :  { %133 = vsyncpa [#allocation4], 1 }
  0x20   :  { %135 = vsyncpa [#allocation4 + $0x1], 1 }

// kernel: tpu_custom_call.1
= control target key start
LH: loop header
LB: loop body
LE: loop exit
PB: predicated region body
PF: predicated region fallthrough
CT: control target
= control target key end

     0   :  { %8 = vsyncpa [#allocation3], 0  ;;  %s809_s0 = inlined_call_operand.hbm [shape: f32[16,24], index: 0, kind: input, shape index: {}]   ;;  %s810_s1 = inlined_call_operand.hbm [shape: bf16[544,128], index: 1, kind: input, shape index: {}]   ;;  %s811_s2 = inlined_call_operand.hbm [shape: f32[5,128], index: 2, kind: input, shape index: {}]   ;;  %s812_s3 = inlined_call_operand.vmem [shape: f32[16,1], index: 3, kind: output, shape index: {}]  }
   0x1   :  { %9 = vsyncpa [#allocation5], 0  ;;  %s27_s14 = sshll.u32 %s810_s1, 4  ;;  %s764_s15 = smov [#allocation4]   ;;  %s28_s14 = int_to_ptr.hbm [resolvable:$true] %s27_s14 }
   0x2   :  { %s29_s16 = sshll.u32 %s764_s15, 4  ;;  %s14_s19 = sshll.u32 %s809_s0, 4  ;;  %s30_s16 = int_to_ptr.vmem [resolvable:$true] %s29_s16  ;;  %s15_s19 = int_to_ptr.hbm [resolvable:$true] %s14_s19 }
   0x3   :  { %s765_s20 = smov 64   ;;  %s766_s21 = smov 4  }
   0x4   :  { %35 = dma.hbm_to_vmem [thread:$0]  %s28_s14, 4352, %s30_s16, [#allocation5], %s765_s20, %s765_s20, %s766_s21  }
   0x5   :  { %s767_s22 = smov [#allocation2]   ;;  %s768_s24 = smov 128  }
   0x6   :  { %s16_s23 = sshll.u32 %s767_s22, 4  ;;  %s769_s25 = smov 8   ;;  %s17_s23 = int_to_ptr.vmem [resolvable:$true] %s16_s23 }
   0x7   :  { %22 = dma.hbm_to_vmem [thread:$0]  %s15_s19, 256, %s17_s23, [#allocation3], %s768_s24, %s768_s24, %s769_s25  }
   0x8   :  { %s41_s27 = sshll.u32 %s811_s2, 4  ;;  %s770_s28 = smov [#allocation6]   ;;  %s42_s27 = int_to_ptr.hbm [resolvable:$true] %s41_s27 }
   0x9   :  { %s43_s29 = sshll.u32 %s770_s28, 4  ;;  %s44_s29 = int_to_ptr.vmem [resolvable:$true] %s43_s29 }
   0xa   :  { %46 = dma.hbm_to_vmem [thread:$0]  %s42_s27, 128, %s44_s29, [#allocation5]  }
   0xb   :  { %760 = dma.done.wait [#allocation3], 256  }
   0xc   :  { %761 = vsyncadd [#allocation3], 4294967040 }
   0xd   :  { %762 = dma.done.wait [#allocation5], 4480  }
   0xe   :  { %763 = vsyncadd [#allocation5], 4294962816  ;;  %v634_v0 = vld [vmem:[#allocation4] sm:$0xff]  ;;  %v60_v1 = vld [vmem:[#allocation2] sm:$0xff]  ;;  %vm73_vm0 = vcmask 130048   ;;  %s771_s0 = smov 112  }
   0xf   :  { %v61_v2 = vld [vmem:[#allocation2 + $0x8] sm:$0xff]  ;;  %v642_v4 = vld [vmem:[#allocation4 + $0x40] sm:$0xff]  ;;  %84 = vmatpush.bf16.msra.mxu0 %v634_v0  ;;  %v640_v6 = vld [vmem:[#allocation4 + $0x30] sm:$0xff]  ;;  %vm201_vm1 = vcmask 1043456   ;;  %vm197_vm2 = vcmask 64512   ;;  %vm489_vm6 = vcmask 7168  }
  0x10   :  { %v64_v3 = vpack.c.bf16 %v61_v2, %v60_v1  ;;  %v641_v5 = vld [vmem:[#allocation4 + $0x38] sm:$0xff]  ;;  %160 = vmatpush.bf16.msra.mxu1 %v642_v4  ;;  %v639_v7 = vld [vmem:[#allocation4 + $0x28] sm:$0xff]  ;;  %v638_v8 = vld [vmem:[#allocation4 + $0x20] sm:$0xff] }
  0x11   :  { %v637_v9 = vld [vmem:[#allocation4 + $0x18] sm:$0xff]  ;;  %v636_v10 = vld [vmem:[#allocation4 + $0x10] sm:$0xff]  ;;  %v635_v11 = vld [vmem:[#allocation4 + $0x8] sm:$0xff] }
  0x12   :  { %502 = vmatmul.msk.bf16.vlgmr.msra.gmra.mxu0 %vm73_vm0, %v64_v3  ;;  %195 = vrot.lane.b32.xlu0 %v64_v3, %s771_s0  ;;  %v650_v12 = vld [vmem:[#allocation4 + $0x80] sm:$0xff]  ;;  %v649_v13 = vld [vmem:[#allocation4 + $0x78] sm:$0xff]  ;;  %v648_v14 = vld [vmem:[#allocation4 + $0x70] sm:$0xff] }
  0x13   :  { %267 = vmatpush.bf16.msra.mxu3 %v650_v12  ;;  %v647_v15 = vld [vmem:[#allocation4 + $0x68] sm:$0xff]  ;;  %v675_v17 = vld [vmem:[#allocation6] ss:$0 sm:$0xff]  ;;  %v646_v24 = vld [vmem:[#allocation4 + $0x60] sm:$0xff] }
  0x14   :  { %161 = vmatpush.bf16.msra.mxu1 %v641_v5  ;;  %v193_v25 = vld [vmem:[#allocation4 + $0x88] sm:$0xf]  ;;  %v645_v26 = vld [vmem:[#allocation4 + $0x58] sm:$0xff]  ;;  %v644_v29 = vld [vmem:[#allocation4 + $0x50] sm:$0xff] }
  0x15   :  { %v203_v27 = vsel %vm201_vm1, %v193_v25, 0  ;;  %v643_v30 = vld [vmem:[#allocation4 + $0x48] sm:$0xff]  ;;  %v657_v32 = vld [vmem:[#allocation4 + $0xc0] sm:$0xff]  ;;  %v676_v34 = vld [vmem:[#allocation6 + $0x1] ss:$0 sm:$0xff] }
  0x16   :  { %212 = vmatpush.bf16.msra.mxu2 %v203_v27  ;;  %v658_v31 = vld [vmem:[#allocation4 + $0xc8] sm:$0xff]  ;;  %v656_v41 = vld [vmem:[#allocation4 + $0xb8] sm:$0xff]  ;;  %v655_v42 = vld [vmem:[#allocation4 + $0xb0] sm:$0xff] }
  0x17   :  { %268 = vmatpush.bf16.msra.mxu3 %v649_v13  ;;  %354 = vmatpush.bf16.msrb.mxu0 %v658_v31  ;;  %v654_v43 = vld [vmem:[#allocation4 + $0xa8] sm:$0xff]  ;;  %v653_v44 = vld [vmem:[#allocation4 + $0xa0] sm:$0xff]  ;;  %v652_v45 = vld [vmem:[#allocation4 + $0x98] sm:$0xff] }
  0x18   :  { %162 = vmatpush.bf16.msra.mxu1 %v640_v6  ;;  %v651_v46 = vld [vmem:[#allocation4 + $0x90] sm:$0xff]  ;;  %v666_v47 = vld [vmem:[#allocation4 + $0x108] sm:$0xff]  ;;  %v665_v48 = vld [vmem:[#allocation4 + $0x100] sm:$0xff] }
  0x19   :  { %v664_v49 = vld [vmem:[#allocation4 + $0xf8] sm:$0xff]  ;;  %v663_v50 = vld [vmem:[#allocation4 + $0xf0] sm:$0xff]  ;;  %v662_v63 = vld [vmem:[#allocation4 + $0xe8] sm:$0xff] }
  0x1a   :  { %437 = vmatpush.bf16.msrb.mxu2 %v666_v47  ;;  %v677_v54 = vld [vmem:[#allocation6 + $0x2] ss:$0 sm:$0xff]  ;;  %v661_v0 = vld [vmem:[#allocation4 + $0xe0] sm:$0xff]  ;;  %v660_v1 = vld [vmem:[#allocation4 + $0xd8] sm:$0xff] }
  0x1b   :  { %269 = vmatpush.bf16.msra.mxu3 %v648_v14  ;;  %355 = vmatpush.bf16.msrb.mxu0 %v657_v32  ;;  %v659_v2 = vld [vmem:[#allocation4 + $0xd0] sm:$0xff] }
  0x1c   :  { %163 = vmatpush.bf16.msra.mxu1 %v639_v7  ;;  %v678_v4 = vld [vmem:[#allocation6 + $0x3] ss:$0 sm:$0xff] }
  0x1e   :  { %438 = vmatpush.bf16.msrb.mxu2 %v665_v48 }
  0x1f   :  { %270 = vmatpush.bf16.msra.mxu3 %v647_v15  ;;  %356 = vmatpush.bf16.msrb.mxu0 %v656_v41 }
  0x20   :  { %164 = vmatpush.bf16.msra.mxu1 %v638_v8 }
  0x22   :  { %439 = vmatpush.bf16.msrb.mxu2 %v664_v49 }
  0x23   :  { %271 = vmatpush.bf16.msra.mxu3 %v646_v24  ;;  %357 = vmatpush.bf16.msrb.mxu0 %v655_v42 }
  0x24   :  { %165 = vmatpush.bf16.msra.mxu1 %v637_v9 }
  0x26   :  { %440 = vmatpush.bf16.msrb.mxu2 %v663_v50 }
  0x27   :  { %272 = vmatpush.bf16.msra.mxu3 %v645_v26  ;;  %358 = vmatpush.bf16.msrb.mxu0 %v654_v43 }
  0x28   :  { %166 = vmatpush.bf16.msra.mxu1 %v636_v10 }
  0x2a   :  { %441 = vmatpush.bf16.msrb.mxu2 %v662_v63 }
  0x2b   :  { %273 = vmatpush.bf16.msra.mxu3 %v644_v29  ;;  %359 = vmatpush.bf16.msrb.mxu0 %v653_v44 }
  0x2c   :  { %167 = vmatpush.bf16.msra.mxu1 %v635_v11  ;;  %v679_v11 = vld [vmem:[#allocation6 + $0x4] ss:$0 sm:$0xff] }
  0x2e   :  { %442 = vmatpush.bf16.msrb.mxu2 %v661_v0 }
  0x2f   :  { %274 = vmatpush.bf16.msra.mxu3 %v643_v30  ;;  %360 = vmatpush.bf16.msrb.mxu0 %v652_v45 }
  0x32   :  { %443 = vmatpush.bf16.msrb.mxu2 %v660_v1 }
  0x33   :  { %361 = vmatpush.bf16.msrb.mxu0 %v651_v46 }
  0x36   :  { %444 = vmatpush.bf16.msrb.mxu2 %v659_v2 }
  0x84   :  { %v196_v28 = vpop.permute.xlu0 %195 }
  0x85   :  { %535 = vmatmul.msk.bf16.vlgmr.msra.gmra.mxu2 %vm197_vm2, %v196_v28 }
  0x8f   :  { %v86_v16 = vpop.f32.mrf.mxu0 }
  0x90   :  { %v87_v18 = vadd.f32 %v675_v17, %v86_v16 }
  0x92   :  { %v91_v21 = vmax.f32 %v87_v18, 0.0 }
  0x97   :  { %v88_v19 = vpop.f32.mrf.mxu0 }
  0x98   :  { %v89_v20 = vadd.f32 %v675_v17, %v88_v19 }
  0x9a   :  { %v92_v22 = vmax.f32 %v89_v20, 0.0 }
  0x9c   :  { %v109_v23 = vpack.c.bf16 %v92_v22, %v91_v21 }
  0x9e   :  { %168 = vmatmul.bf16.vlgmr.msra.gmra.mxu1 %v109_v23 }
 0x108   :  { %v214_v51 = vpop.f32.mrf.mxu2 }
 0x110   :  { %v216_v55 = vpop.f32.mrf.mxu2 }
 0x11b   :  { %v169_v33 = vpop.f32.mrf.mxu1 }
 0x11c   :  { %v170_v35 = vadd.f32 %v676_v34, %v169_v33 }
 0x11e   :  { %v174_v38 = vmax.f32 %v170_v35, 0.0 }
 0x123   :  { %v171_v36 = vpop.f32.mrf.mxu1 }
 0x124   :  { %v172_v37 = vadd.f32 %v676_v34, %v171_v36 }
 0x126   :  { %v175_v39 = vmax.f32 %v172_v37, 0.0 }
 0x128   :  { %v192_v40 = vpack.c.bf16 %v175_v39, %v174_v38 }
 0x12a   :  { %275 = vmatmul.bf16.vlgmr.msra.gmra.mxu3 %v192_v40 }
 0x1ad   :  { %v276_v52 = vpop.f32.mrf.mxu3 }
 0x1ae   :  { %v277_v53 = vadd.f32 %v276_v52, %v214_v51 }
 0x1b0   :  { %v283_v57 = vadd.f32 %v677_v54, %v277_v53 }
 0x1b2   :  { %v285_v60 = vmax.f32 %v283_v57, 0.0 }
 0x1b5   :  { %v278_v56 = vpop.f32.mrf.mxu3 }
 0x1b6   :  { %v279_v58 = vadd.f32 %v278_v56, %v216_v55 }
 0x1b8   :  { %v284_v59 = vadd.f32 %v677_v54, %v279_v58 }
 0x1ba   :  { %v286_v61 = vmax.f32 %v284_v59, 0.0 }
 0x1bc   :  { %v303_v62 = vpack.c.bf16 %v286_v61, %v285_v60 }
 0x1be   :  { %362 = vmatmul.bf16.vlgmr.msrb.gmra.mxu0 %v303_v62 }
 0x23b   :  { %v363_v3 = vpop.f32.mrf.mxu0 }
 0x23c   :  { %v364_v5 = vadd.f32 %v678_v4, %v363_v3 }
 0x23e   :  { %v368_v8 = vmax.f32 %v364_v5, 0.0 }
 0x243   :  { %v365_v6 = vpop.f32.mrf.mxu0 }
 0x244   :  { %v366_v7 = vadd.f32 %v678_v4, %v365_v6 }
 0x246   :  { %v369_v9 = vmax.f32 %v366_v7, 0.0 }
 0x248   :  { %v386_v10 = vpack.c.bf16 %v369_v9, %v368_v8 }
 0x24a   :  { %445 = vmatmul.bf16.vlgmr.msrb.gmra.mxu2 %v386_v10 }
 0x2cd   :  { %v446_v12 = vpop.f32.mrf.mxu2 }
 0x2ce   :  { %v447_v13 = vadd.f32 %v679_v11, %v446_v12 }
 0x2d0   :  { %v632_v14 = vmul.f32 -1.442695, %v447_v13 }
 0x2d2   :  { %680 = vpow2.f32 %v632_v14 }
 0x2d5   :  { %v448_v15 = vpop.f32.mrf.mxu2 }
 0x2d6   :  { %v449_v16 = vadd.f32 %v679_v11, %v448_v15 }
 0x2d8   :  { %v681_v17 = vpop.eup %680  ;;  %v633_v18 = vmul.f32 -1.442695, %v449_v16 }
 0x2d9   :  { %v457_v19 = vadd.f32 1.0, %v681_v17 }
 0x2da   :  { %682 = vpow2.f32 %v633_v18 }
 0x2db   :  { %684 = vrcp.f32 %v457_v19  ;;  %v470_v25 = vand.u32 2147483648, %v457_v19  ;;  %v468_v27 = vand.u32 2147483647, %v457_v19  ;;  %vm464_vm4 = vweird.f32 %v457_v19 }
 0x2dd   :  { %v471_v30 = vor.u32 1.1754944e-38, %v470_v25  ;;  %vm469_vm7 = vcmp.eq.f32.partialorder %v468_v27, 8.507059e+37 }
 0x2e0   :  { %v683_v20 = vpop.eup %682 }
 0x2e1   :  { %v685_v21 = vpop.eup %684  ;;  %v458_v22 = vadd.f32 1.0, %v683_v20 }
 0x2e2   :  { %v460_v23 = vmul.f32 %v685_v21, %v457_v19  ;;  %vm465_vm3 = vweird.f32 %v685_v21 }
 0x2e3   :  { %686 = vrcp.f32 %v458_v22  ;;  %vm466_vm5 = vmor %vm464_vm4, %vm465_vm3  ;;  %v485_v35 = vand.u32 2147483648, %v458_v22  ;;  %v483_v37 = vand.u32 2147483647, %v458_v22  ;;  %vm479_vm9 = vweird.f32 %v458_v22 }
 0x2e4   :  { %v461_v24 = vsub.f32 1.0, %v460_v23 }
 0x2e5   :  { %v486_v39 = vor.u32 1.1754944e-38, %v485_v35  ;;  %vm484_vm11 = vcmp.eq.f32.partialorder %v483_v37, 8.507059e+37 }
 0x2e6   :  { %v462_v26 = vmul.f32 %v685_v21, %v461_v24 }
 0x2e8   :  { %v463_v28 = vadd.f32 %v685_v21, %v462_v26 }
 0x2e9   :  { %v687_v29 = vpop.eup %686 }
 0x2ea   :  { %v467_v31 = vsel %vm466_vm5, %v685_v21, %v463_v28  ;;  %v475_v32 = vmul.f32 %v687_v29, %v458_v22  ;;  %vm480_vm8 = vweird.f32 %v687_v29 }
 0x2eb   :  { %v472_v33 = vsel %vm469_vm7, %v471_v30, %v467_v31  ;;  %vm481_vm10 = vmor %vm479_vm9, %vm480_vm8 }
 0x2ec   :  { %490 = vst.msk [vmem:[%s812_s3] sm:$0xff] %vm489_vm6, %v472_v33  ;;  %v476_v34 = vsub.f32 1.0, %v475_v32 }
 0x2ee   :  { %v477_v36 = vmul.f32 %v687_v29, %v476_v34 }
 0x2f0   :  { %v478_v38 = vadd.f32 %v687_v29, %v477_v36 }
 0x2f2   :  { %v482_v40 = vsel %vm481_vm10, %v687_v29, %v478_v38 }
 0x2f3   :  { %v487_v41 = vsel %vm484_vm11, %v486_v39, %v482_v40 }
 0x2f4   :  { %491 = vst.msk [vmem:[%s812_s3 + $0x8] sm:$0xff] %vm489_vm6, %v487_v41 }
 0x2f5   :  { %496 = vsyncpa [#allocation3], 1 }
 0x2f6   :  { %497 = vsyncpa [#allocation5], 1 }

</bundles_post_ra>
